<compile_context>
chip_gen: v5e
topology: v5e:2x2
jax: 0.10.0
libtpu: 0.0.40
codegen_flags: <defaults>
</compile_context>

<pallas_src>
import functools

import jax
import jax.numpy as jnp
from jax.experimental import pallas as pl
from jax.experimental.pallas import tpu as pltpu

LANES = 128
SUB_ROWS = 512        # in-kernel sub-chunk: 512*128*4 B = 256 KiB per temp
MAX_BLOCK_ROWS = 8192  # 8192*128*4 B = 4 MiB per input per grid block


def _round_up(x, m):
    return ((x + m - 1) // m) * m


def _bce_blur_kernel(pred_ref, true_ref, out_ref, *, alpha, rows_total,
                     block_rows, sub_rows, mask_last_block):
    i = pl.program_id(0)
    inv_blur = 1.0 / (alpha + 1e-4)          # trace-time Python constant
    num_sub = block_rows // sub_rows

    def chunk_partial(c, masked):
        base = pl.multiple_of(c * sub_rows, sub_rows)   # sub_rows % 8 == 0
        x = pred_ref[pl.ds(base, sub_rows), :].astype(jnp.float32)
        t = true_ref[pl.ds(base, sub_rows), :].astype(jnp.float32)

        # Numerically-stable BCE-with-logits; e = exp(-|x|) is shared between
        # the log term and the sigmoid (cuts one EUP pass per element).
        e = jnp.exp(-jnp.abs(x))
        one_pe = 1.0 + e
        bce = jnp.maximum(x, 0.0) - x * t + jnp.log(one_pe)

        inv_1pe = pl.reciprocal(one_pe, approx=True)     # EUP vrcp, ~2^-12 rel
        p = jnp.where(x >= 0.0, inv_1pe, e * inv_1pe)    # sigmoid(x)

        dx = p - t
        loss = bce * (1.0 - jnp.exp((dx - 1.0) * inv_blur))

        if masked:
            # Row-level validity (only the last grid block can overhang the
            # array); int32-safe up to 2^31 rows (~2.7e11 elements).
            local_row = jax.lax.broadcasted_iota(jnp.int32, loss.shape, 0)
            grow = i * block_rows + base + local_row
            loss = jnp.where(grow < rows_total, loss, 0.0)

        # Sublane-group fold -> lane-dense (8, LANES) partial (VPU adds only;
        # the single cross-lane reduction happens once, in the wrapper).
        return loss.reshape(sub_rows // 8, 8, LANES).sum(axis=0)

    def run(masked):
        def body(c, acc):
            return acc + chunk_partial(c, masked)
        acc0 = jnp.zeros((8, LANES), jnp.float32)
        out_ref[0] = jax.lax.fori_loop(0, num_sub, body, acc0)

    if mask_last_block:
        last = pl.num_programs(0) - 1

        @pl.when(i < last)
        def _():
            run(False)

        @pl.when(i == last)
        def _():
            run(True)
    else:
        run(False)


def _tail_loss_sum(x, t, alpha):
    # Pure-jnp loss sum for the (< 128 element) ragged tail.
    x = x.astype(jnp.float32)
    t = t.astype(jnp.float32)
    e = jnp.exp(-jnp.abs(x))
    bce = jnp.maximum(x, 0.0) - x * t + jnp.log1p(e)
    p = jax.nn.sigmoid(x)
    af = 1.0 - jnp.exp((p - t - 1.0) / (alpha + 1e-4))
    return jnp.sum(bce * af)


def bce_blur_with_logits_loss(pred, true, alpha=0.05):
    assert pred.shape == true.shape
    n = int(pred.size)
    if n == 0:
        return jnp.float32(0.0)

    flat_pred = pred.reshape(-1)
    flat_true = true.reshape(-1)

    # Lane-aligned prefix goes through the kernel; any ragged tail is a tiny
    # wrapper-side jnp expression (avoids a full-array jnp.pad memory pass).
    n_main = (n // LANES) * LANES
    tail_sum = None
    if n_main != n:
        tail_sum = _tail_loss_sum(flat_pred[n_main:], flat_true[n_main:], alpha)
        if n_main == 0:
            return tail_sum / jnp.float32(n)
        # TODO(synk): this prefix slice still costs one copy of the inputs when
        # n % 128 != 0; pass %128-aligned flats to make this path zero-copy too.
        flat_pred = flat_pred[:n_main]
        flat_true = flat_true[:n_main]

    rows = n_main // LANES
    pred2d = flat_pred.reshape(rows, LANES)   # zero-copy reshape (contiguous)
    true2d = flat_true.reshape(rows, LANES)

    # Block sizing:
    #  * large blocks amortize per-grid-step overhead,
    #  * aim for >= 2 grid steps so both v7x TensorCores get work on the
    #    "parallel" axis,
    #  * keep block_rows a multiple of the in-kernel sub-chunk so the dynamic
    #    sub-slices never read past the VMEM block.
    if rows >= 2 * MAX_BLOCK_ROWS:
        block_rows = MAX_BLOCK_ROWS
    else:
        block_rows = min(MAX_BLOCK_ROWS, max(8, _round_up(pl.cdiv(rows, 2), 8)))
    sub_rows = min(SUB_ROWS, block_rows)
    block_rows = _round_up(block_rows, sub_rows)
    num_blocks = pl.cdiv(rows, block_rows)
    mask_last_block = (num_blocks * block_rows != rows)

    kernel = functools.partial(
        _bce_blur_kernel,
        alpha=float(alpha),
        rows_total=int(rows),
        block_rows=int(block_rows),
        sub_rows=int(sub_rows),
        mask_last_block=bool(mask_last_block),
    )

    partials = pl.pallas_call(
        kernel,
        out_shape=jax.ShapeDtypeStruct((num_blocks, 8, LANES), jnp.float32),
        grid_spec=pltpu.PrefetchScalarGridSpec(
            num_scalar_prefetch=0,
            grid=(num_blocks,),
            in_specs=[
                pl.BlockSpec((block_rows, LANES), lambda i: (i, 0)),
                pl.BlockSpec((block_rows, LANES), lambda i: (i, 0)),
            ],
            out_specs=pl.BlockSpec((1, 8, LANES), lambda i: (i, 0, 0)),
        ),
        compiler_params=pltpu.CompilerParams(
            dimension_semantics=("parallel",),
            # 16 MiB of double-buffered inputs at 8192 rows + elementwise temps;
            # raise above v5e's 16 MiB scoped default, well under every chip's
            # physical VMEM (64 MiB on v7x, 128 MiB on v5e/v6e).
            vmem_limit_bytes=32 * 1024 * 1024,
        ),
    )(pred2d, true2d)

    total = jnp.sum(partials)
    if tail_sum is not None:
        total = total + tail_sum
    return total / jnp.float32(n)


def _reference(pred, true, alpha=0.05):
    x = pred.astype(jnp.float32)
    t = true.astype(jnp.float32)
    bce = jnp.maximum(x, 0.0) - x * t + jnp.log1p(jnp.exp(-jnp.abs(x)))
    p = jax.nn.sigmoid(x)
    af = 1.0 - jnp.exp((p - t - 1.0) / (alpha + 1e-4))
    return jnp.mean(bce * af)


if __name__ == "__main__":
    key = jax.random.PRNGKey(0)
    k1, k2, k3, k4 = jax.random.split(key, 4)

    # Small shapes consistent with a conv-head output (NCHW), lane-aligned:
    # exercises the 2-block "parallel" grid with no masking.
    pred = jax.random.normal(k1, (2, 4, 16, 16), dtype=jnp.float32)
    true = (jax.random.uniform(k2, (2, 4, 16, 16)) > 0.5).astype(jnp.float32)
    out = jax.block_until_ready(bce_blur_with_logits_loss(pred, true, alpha=0.05))
    ref = _reference(pred, true, alpha=0.05)
    # rtol 5e-4 leaves headroom for the approx-reciprocal sigmoid (~2^-12 rel).
    assert jnp.allclose(out, ref, rtol=5e-4, atol=1e-6), (out, ref)

    # Unaligned shape: exercises the in-kernel row mask + wrapper tail path.
    pred2 = jax.random.normal(k3, (3, 5, 7, 9), dtype=jnp.float32)
    true2 = (jax.random.uniform(k4, (3, 5, 7, 9)) > 0.5).astype(jnp.float32)
    out2 = jax.block_until_ready(bce_blur_with_logits_loss(pred2, true2, alpha=0.05))
    ref2 = _reference(pred2, true2, alpha=0.05)
    assert jnp.allclose(out2, ref2, rtol=5e-4, atol=1e-6), (out2, ref2)

    print("KERNEL_OK")
</pallas_src>

<mosaic_0001>
module attributes {stable_mosaic.version = 11 : i64} {
  func.func @_bce_blur_kernel(%arg0: i32, %arg1: memref<8x128xf32, #tpu.memory_space<vmem>>, %arg2: memref<8x128xf32, #tpu.memory_space<vmem>>, %arg3: memref<1x8x128xf32, #tpu.memory_space<vmem>>) attributes {dimension_semantics = [#tpu.dimension_semantics<parallel>], iteration_bounds = array<i64: 2>, scalar_prefetch = 0 : i64, scratch_operands = 0 : i64, tpu.core_type = #tpu.core_type<tc>, window_params = [{transform_indices = @transform_0, window_bounds = array<i64: 8, 128>}, {transform_indices = @transform_1, window_bounds = array<i64: 8, 128>}, {transform_indices = @transform_2, window_bounds = array<i64: 1, 8, 128>}]} {
    %cst = arith.constant 0.000000e+00 : f32
    %0 = vector.broadcast %cst : f32 to vector<8x128xf32>
    %c0_i32 = arith.constant 0 : i32
    %c8_i32 = arith.constant 8 : i32
    %1 = arith.muli %c0_i32, %c8_i32 : i32
    %2 = tpu.assume_multiple %1, 8 : i32
    %3 = arith.index_cast %2 : i32 to index
    %c0 = arith.constant 0 : index
    %4 = vector.load %arg1[%3, %c0] : memref<8x128xf32, #tpu.memory_space<vmem>>, vector<8x128xf32>
    %5 = arith.index_cast %2 : i32 to index
    %c0_0 = arith.constant 0 : index
    %6 = vector.load %arg2[%5, %c0_0] : memref<8x128xf32, #tpu.memory_space<vmem>>, vector<8x128xf32>
    %7 = math.absf %4 : vector<8x128xf32>
    %cst_1 = arith.constant 0.000000e+00 : f32
    %8 = vector.broadcast %cst_1 : f32 to vector<8x128xf32>
    %9 = arith.subf %8, %7 : vector<8x128xf32>
    %10 = math.exp %9 : vector<8x128xf32>
    %cst_2 = arith.constant 1.000000e+00 : f32
    %11 = vector.broadcast %cst_2 : f32 to vector<8x128xf32>
    %12 = arith.addf %11, %10 : vector<8x128xf32>
    %cst_3 = arith.constant 0.000000e+00 : f32
    %13 = vector.broadcast %cst_3 : f32 to vector<8x128xf32>
    %14 = arith.maximumf %4, %13 : vector<8x128xf32>
    %15 = arith.mulf %4, %6 : vector<8x128xf32>
    %16 = arith.subf %14, %15 : vector<8x128xf32>
    %17 = math.log %12 : vector<8x128xf32>
    %18 = arith.addf %16, %17 : vector<8x128xf32>
    %19 = tpu.reciprocal %12 {approx = true} : vector<8x128xf32> -> vector<8x128xf32>
    %cst_4 = arith.constant 0.000000e+00 : f32
    %20 = vector.broadcast %cst_4 : f32 to vector<8x128xf32>
    %21 = arith.cmpf oge, %4, %20 : vector<8x128xf32>
    %22 = arith.mulf %10, %19 : vector<8x128xf32>
    %23 = arith.select %21, %19, %22 : vector<8x128xi1>, vector<8x128xf32>
    %24 = arith.subf %23, %6 : vector<8x128xf32>
    %cst_5 = arith.constant 1.000000e+00 : f32
    %25 = vector.broadcast %cst_5 : f32 to vector<8x128xf32>
    %26 = arith.subf %24, %25 : vector<8x128xf32>
    %cst_6 = arith.constant 19.9600792 : f32
    %27 = vector.broadcast %cst_6 : f32 to vector<8x128xf32>
    %28 = arith.mulf %26, %27 : vector<8x128xf32>
    %29 = math.exp %28 : vector<8x128xf32>
    %cst_7 = arith.constant 1.000000e+00 : f32
    %30 = vector.broadcast %cst_7 : f32 to vector<8x128xf32>
    %31 = arith.subf %30, %29 : vector<8x128xf32>
    %32 = arith.mulf %18, %31 : vector<8x128xf32>
    %33 = vector.shape_cast %32 : vector<8x128xf32> to vector<1x8x128xf32>
    %cst_8 = arith.constant dense<0.000000e+00> : vector<8x128xf32>
    %34 = vector.multi_reduction <add>, %33, %cst_8 [0] : vector<1x8x128xf32> to vector<8x128xf32>
    %35 = arith.addf %0, %34 : vector<8x128xf32>
    %c1_i32 = arith.constant 1 : i32
    %c0_9 = arith.constant 0 : index
    %c0_10 = arith.constant 0 : index
    %c0_11 = arith.constant 0 : index
    %36 = vector.load %arg3[%c0_9, %c0_10, %c0_11] : memref<1x8x128xf32, #tpu.memory_space<vmem>>, vector<1x8x128xf32>
    %37 = vector.shape_cast %36 : vector<1x8x128xf32> to vector<8x128xf32>
    %38 = vector.shape_cast %35 : vector<8x128xf32> to vector<1x8x128xf32>
    tpu.vector_store %arg3[%c0_9, %c0_10, %c0_11], %38 {strides = array<i32>} : memref<1x8x128xf32, #tpu.memory_space<vmem>>, vector<1x8x128xf32>,
    return
  }
  func.func @transform_0(%arg0: i32) -> (i32, i32) {
    %c0_i32 = arith.constant 0 : i32
    %c0_i32_0 = arith.constant 0 : i32
    return %arg0, %c0_i32 : i32, i32
  }
  func.func @transform_1(%arg0: i32) -> (i32, i32) {
    %c0_i32 = arith.constant 0 : i32
    %c0_i32_0 = arith.constant 0 : i32
    return %arg0, %c0_i32 : i32, i32
  }
  func.func @transform_2(%arg0: i32) -> (i32, i32, i32) {
    %c0_i32 = arith.constant 0 : i32
    %c0_i32_0 = arith.constant 0 : i32
    %c0_i32_1 = arith.constant 0 : i32
    return %arg0, %c0_i32, %c0_i32_0 : i32, i32, i32
  }
}

</mosaic_0001>

<bundles_post_ra>
// kernel: tpu_custom_call.1
= control target key start
LH: loop header
LB: loop body
LE: loop exit
PB: predicated region body
PF: predicated region fallthrough
CT: control target
= control target key end

     0   :  { %7 = vsyncpa [#allocation3], 0  ;;  %s723_s0 = inlined_call_operand.hbm [shape: f32[16,128], index: 0, kind: input, shape index: {}]   ;;  %s724_s1 = inlined_call_operand.hbm [shape: f32[16,128], index: 1, kind: input, shape index: {}]   ;;  %s725_s2 = inlined_call_operand.hbm [shape: f32[2,8,128], index: 2, kind: output, shape index: {}]  }
   0x1   :  { %9 = vsyncpa [#allocation3 + $0x1], 0 }
   0x2   :  { %10 = vsyncpa [#allocation6], 0 }
   0x3   :  { %12 = vsyncpa [#allocation6 + $0x1], 0 }
   0x4   :  { %13 = vsyncpa [#allocation4], 0 }
   0x5   :  { %15 = vsyncpa [#allocation4 + $0x1], 0  ;;  %s558_s9 = smov 0   ;;  %s560_s10 = smov 0  }
   0x6   :  { %s562_s11 = smov 0   ;;  %s564_s12 = smov 0  }
   0x7 LB: > { %s579_s13 = sadd.s32 4294967295, %s541_s12   ;;  %s336_s14 = sadd.s32 4294967294, %s541_s12   ;;  %s541_s12 = sphi %s564_s12, %s736_s12   ;;  %s537_s11 = sphi %s562_s11, %s735_s11   ;;  %s533_s10 = sphi %s560_s10, %s734_s10   ;;  %s529_s9 = sphi %s558_s9, %s733_s9  }
   0x8   : > { %s583_s15 = sadd.s32 1, %s541_s12   ;;  %s28_s16 = sadd.s32 1, %s537_s11 }
   0x9   : > { %s25_s17 = ssub.s32 %s541_s12, %s583_s15  ;;  %p35_p0 = scmp.ne.s32.totalorder %s537_s11, %s533_s10 }
   0xa   : > { %p26_p1 = scmp.eq.s32.totalorder %s25_s17, 0  ;;  %p36_p2 = scmp.eq.s32.totalorder %s541_s12, 0 }
   0xb   : > { %p41_p3 = scmp.ne.s32.totalorder %s533_s10, %s529_s9  ;;  %p42_p4 = scmp.eq.s32.totalorder %s579_s13, 0 }
   0xc   : > { %s595_s18 = scalar_select %p26_p1, %s537_s11, %s28_s16  }
   0xd   : > { %p597_p5 = por %p36_p2, %p35_p0  ;;  %p601_p6 = por %p42_p4, %p41_p3 }
   0xe   : > { %p91_p7 = scmp.eq.s32.totalorder %s579_s13, 1  ;;  %p97_p8 = scmp.eq.s32.totalorder %s336_s14, 1 }
   0xf   : > { %p369_p10 = scmp.lt.s32.totalorder %s541_s12, 2  ;;  %s617_s23 = sand.u32 1, %s537_s11  }
  0x10   : > { %p608_p11 = por %p91_p7, %p35_p0  ;;  %p612_p12 = por %p97_p8, %p41_p3 }
  0x11   : > { %s340_s24 = sshll.u32 %s541_s12, 3  ;;  %s339_s25 = sshll.u32 %s617_s23, 3 }
  0x12   : > { %s125_s28 = scalar_lea.hbm %s723_s0, %s340_s24  ;;  %s121_s30 = scalar_lea.vmem [#allocation2], %s339_s25 }
  0x13   : > { %s127_s29 = sshll.u32 %s125_s28, 4  ;;  %s129_s3 = sshll.u32 %s121_s30, 4  ;;  %s128_s29 = int_to_ptr.hbm [resolvable:$true] %s127_s29  ;;  %s130_s3 = int_to_ptr.vmem [resolvable:$true] %s129_s3 }
  0x14   : > { %p626_p13 = pnand %p369_p10, %p597_p5  ;;  %p343_p0 = scmp.ge.s32.totalorder %s541_s12, 1 }
  0x15   : > { %p153_p1 = scmp.lt.s32.totalorder %s541_s12, 3  ;;  %s118_s5 = scalar_lea.sflag [#allocation3], %s617_s23 }
  0x16   : > { %s411_s6 = sshra.s32 %s128_s29, 4  ;;  %p415_p3 = pneg %p626_p13  ;;  %s412_s6 = int_to_ptr.hbm [resolvable:$true] %s411_s6 }
  0x17   : > { %s413_s7 = scalar_lea.hbm %s412_s6, 8  ;;  %s418_s16 = scalar_lea.hbm %s723_s0, 16 }
  0x18   : > { %p414_p2 = scmp.ne.s32.totalorder %s412_s6, %s413_s7  ;;  %p419_p5 = scmp.lt.s32.totalorder %s412_s6, %s723_s0 }
  0x19   : > { %p420_p8 = scmp.lt.s32.totalorder %s418_s16, %s413_s7 }
  0x1a   : > { %p416_p4 = pnand %p415_p3, %p414_p2 }
  0x1b   : > { %p421_p10 = por %p420_p8, %p419_p5 }
  0x1c   : > { %p417_p7 = pneg %p416_p4 }
  0x1e   : > { %p422_p9 = pnand %p421_p10, %p417_p7 }
  0x20   : > { %425 = shalt.err (!%p422_p9)
}
  0x21   : > { %361 = dma.hbm_to_vmem [thread:$0]  (!%p626_p13), %s128_s29, 128, %s130_s3, %s118_s5  }
  0x22   : > { %p650_p2 = pnand %p343_p0, %p153_p1  ;;  %s144_s30 = scalar_lea.hbm %s724_s1, %s340_s24 }
  0x23   : > { %s146_s6 = sshll.u32 %s144_s30, 4  ;;  %s140_s7 = scalar_lea.vmem [#allocation5], %s339_s25  ;;  %s147_s6 = int_to_ptr.hbm [resolvable:$true] %s146_s6 }
  0x24   : > { %s148_s8 = sshll.u32 %s140_s7, 4  ;;  %s137_s14 = scalar_lea.sflag [#allocation6], %s617_s23  ;;  %s149_s8 = int_to_ptr.vmem [resolvable:$true] %s148_s8 }
  0x25   : > { %s441_s16 = sshra.s32 %s147_s6, 4  ;;  %s448_s5 = scalar_lea.hbm %s724_s1, 16  ;;  %s442_s16 = int_to_ptr.hbm [resolvable:$true] %s441_s16 }
  0x26   : > { %s443_s17 = scalar_lea.hbm %s442_s16, 8  ;;  %p449_p4 = scmp.lt.s32.totalorder %s442_s16, %s724_s1 }
  0x27   : > { %p444_p9 = scmp.ne.s32.totalorder %s442_s16, %s443_s17  ;;  %p450_p7 = scmp.lt.s32.totalorder %s448_s5, %s443_s17 }
  0x29   : > { %p446_p0 = pnand %p444_p9, %p415_p3  ;;  %p451_p5 = por %p450_p7, %p449_p4 }
  0x2b   : > { %p447_p1 = pneg %p446_p0 }
  0x2d   : > { %p452_p8 = pnand %p451_p5, %p447_p1 }
  0x2f   : > { %455 = shalt.err (!%p452_p8)
}
  0x30   : > { %364 = dma.hbm_to_vmem [thread:$0]  (!%p626_p13), %s147_s6, 128, %s149_s8, %s137_s14  }
  0x31   : > { %157 = sbr.rel (%p650_p2) target bundleno = 105 (0x69), region = 28  ;;  %s672_s23 = sand.u32 (!%p650_p2), 1, %s533_s10  }
  0x32   : > { %s675_s25 = sshll.u32 (!%p650_p2), %s672_s23, 3  ;;  %s160_s27 = scalar_lea.sflag (!%p650_p2), [#allocation3], %s672_s23 }
  0x33   : > { %s163_s28 = scalar_lea.vmem (!%p650_p2), [#allocation2], %s675_s25 }
  0x36   : > { %516 = dma.done.wait (%p601_p6), %s160_s27, 128  }
  0x37   : > { %518 = vsyncadd (%p601_p6), %s160_s27, 4294967168  ;;  %s170_s4 = scalar_lea.sflag [#allocation6], %s672_s23  ;;  %s173_s26 = scalar_lea.vmem [#allocation5], %s675_s25 }
  0x38   : > { %520 = dma.done.wait (%p601_p6), %s170_s4, 128  }
  0x39   : > { %522 = vsyncadd (%p601_p6), %s170_s4, 4294967168  ;;  %v200_v0 = vld [vmem:[%s163_s28] sm:$0xff]  ;;  %v201_v7 = vld [vmem:[%s173_s26] sm:$0xff]  ;;  %s349_s20 = sshll.u32 %s579_s13, 3  ;;  %s199_s8 = scalar_lea.vmem [#allocation7], %s675_s25 }
  0x3a   : > { %v202_v1 = vand.u32 2147483647, %v200_v0  ;;  %vm214_vm0 = vcmp.ge.f32.partialorder %v200_v0, 0.0  ;;  %v207_v13 = vmax.f32 %v200_v0, 0.0  ;;  %v208_v14 = vmul.f32 %v201_v7, %v200_v0  ;;  %s238_s7 = scalar_lea.hbm %s725_s2, %s349_s20  ;;  %s240_s14 = sshll.u32 %s199_s8, 4  ;;  %s241_s14 = int_to_ptr.vmem [resolvable:$true] %s240_s14 }
  0x3b   : > { %s242_s16 = sshll.u32 %s238_s7, 4  ;;  %s228_s17 = scalar_lea.sflag [#allocation4], %s672_s23  ;;  %s243_s16 = int_to_ptr.hbm [resolvable:$true] %s242_s16 }
  0x3c   : > { %v203_v2 = vsub.f32 0.0, %v202_v1  ;;  %v209_v17 = vsub.f32 %v207_v13, %v208_v14  ;;  %s485_s29 = sshra.s32 %s243_s16, 4  ;;  %s491_s19 = scalar_lea.hbm %s725_s2, 16  ;;  %s486_s29 = int_to_ptr.hbm [resolvable:$true] %s485_s29 }
  0x3d   : > { %s487_s13 = scalar_lea.hbm %s486_s29, 8  ;;  %p492_p10 = scmp.lt.s32.totalorder %s486_s29, %s725_s2 }
  0x3e   : > { %v204_v3 = vmul.f32 1.442695, %v203_v2  ;;  %p488_p6 = scmp.ne.s32.totalorder %s486_s29, %s487_s13  ;;  %p493_p2 = scmp.lt.s32.totalorder %s491_s19, %s487_s13 }
  0x40   : > { %403 = vpow2.f32 %v204_v3  ;;  %p489_p13 = pnand %p488_p6, %p608_p11  ;;  %p494_p9 = por %p493_p2, %p492_p10 }
  0x42   : > { %p490_p3 = pneg %p489_p13 }
  0x44   : > { %p495_p0 = pnand %p494_p9, %p490_p3 }
  0x46   : > { %v404_v4 = vpop.eup %403 }
  0x47   : > { %v206_v5 = vadd.f32 1.0, %v404_v4 }
  0x49   : > { %405 = vrcp.f32 %v206_v5 }
  0x4a   : > { %407 = vlog2.f32 %v206_v5 }
  0x4f   : > { %v406_v6 = vpop.eup %405 }
  0x50   : > { %v215_v8 = vmul.f32 %v406_v6, %v404_v4  ;;  %v408_v15 = vpop.eup %407 }
  0x51   : > { %v211_v18 = vmul.f32 0.6931472, %v408_v15 }
  0x52   : > { %v216_v9 = vsel %vm214_vm0, %v406_v6, %v215_v8 }
  0x53   : > { %v217_v10 = vsub.f32 %v216_v9, %v201_v7  ;;  %v212_v19 = vadd.f32 %v211_v18, %v209_v17 }
  0x55   : > { %v347_v11 = vadd.f32 -1.0, %v217_v10 }
  0x57   : > { %v219_v12 = vmul.f32 19.96008, %v347_v11 }
  0x59   : > { %v220_v16 = vmul.f32 1.442695, %v219_v12 }
  0x5b   : > { %409 = vpow2.f32 %v220_v16 }
  0x61   : > { %v410_v20 = vpop.eup %409 }
  0x62   : > { %v222_v21 = vsub.f32 1.0, %v410_v20 }
  0x64   : > { %v223_v22 = vmul.f32 %v222_v21, %v212_v19 }
  0x66   : > { %226 = vst [vmem:[%s199_s8] sm:$0xff] %v223_v22 }
  0x67   : > { %498 = shalt.err (!%p495_p0)
}
  0x68   : > { %356 = dma.vmem_to_hbm [thread:$0]  (%p608_p11), %s241_s14, 128, %s243_s16, %s228_s17  }
  0x69 PF: > { %s254_s23 = sand.u32 1, %s529_s9   ;;  %p732_p1 = scmp.ge.s32.totalorder %s541_s12, 2 }
  0x6a   : > { %s255_s27 = scalar_lea.sflag [#allocation4], %s254_s23 }
  0x6b   : > { %p366_p4 = pnand %p732_p1, %p612_p12 }
  0x6d   : > { %p367_p7 = pneg %p366_p4 }
  0x6f   : > { %524 = dma.done.wait (%p367_p7), %s255_s27, 128  }
  0x70   : > { %526 = vsyncadd (%p367_p7), %s255_s27, 4294967168  ;;  %p18_p5 = scmp.ge.s32.totalorder %s583_s15, 4   ;;  %s733_s9 = smov %s533_s10 }
  0x71   : > { %s734_s10 = smov %s537_s11  ;;  %s735_s11 = smov %s595_s18 }
  0x72   : > { %s736_s12 = smov %s583_s15  ;;  %20 = sbr.rel (!%p18_p5) target bundleno = 7 (0x7), region = 86 }
  0x77   :  { %261 = vsyncpa [#allocation3], 1 }
  0x78   :  { %263 = vsyncpa [#allocation3 + $0x1], 1 }
  0x79   :  { %264 = vsyncpa [#allocation6], 1 }
  0x7a   :  { %266 = vsyncpa [#allocation6 + $0x1], 1 }
  0x7b   :  { %267 = vsyncpa [#allocation4], 1 }
  0x7c   :  { %269 = vsyncpa [#allocation4 + $0x1], 1 }

</bundles_post_ra>
